<compile_context>
chip_gen: v7x
topology: tpu7x:2x2x1
jax: 0.10.0
libtpu: 0.0.40
codegen_flags: <defaults>
</compile_context>

<pallas_src>
import jax
import jax.numpy as jnp
from jax.experimental import pallas as pl
from jax.experimental.pallas import tpu as pltpu

_TILE = 512            # multiple of 256: good for v6e/v7x MXU, fine on v5e
_VMEM_LIMIT = 48 * 1024 * 1024


# --------------------------------------------------------------------------
# Kernels
# --------------------------------------------------------------------------
def _qnet_fused_kernel(adj_ref, x_ref, w1_ref, b1_ref, w2_ref, b2_ref,
                       wf_ref, bf_ref, q_ref):
    """Whole QNetwork in one call: everything VMEM-resident, h1 never hits HBM."""
    adj = adj_ref[...]                                           # bf16
    agg1 = jnp.dot(adj, x_ref[...], preferred_element_type=jnp.float32)
    h1 = jnp.maximum(
        jnp.dot(agg1.astype(jnp.bfloat16), w1_ref[...],
                preferred_element_type=jnp.float32) + b1_ref[...], 0.0)
    agg2 = jnp.dot(adj, h1.astype(jnp.bfloat16),
                   preferred_element_type=jnp.float32)
    h2 = jnp.maximum(
        jnp.dot(agg2.astype(jnp.bfloat16), w2_ref[...],
                preferred_element_type=jnp.float32) + b2_ref[...], 0.0)
    q = jnp.dot(h2.astype(jnp.bfloat16), wf_ref[...],
                preferred_element_type=jnp.float32) + bf_ref[...]
    q_ref[...] = q.astype(q_ref.dtype)


def _gcn_layer_kernel(adj_ref, x_ref, w_ref, b_ref, h_ref, acc_ref):
    """One GCN layer, tiled: h = relu((adj @ x) @ W + b).

    adj streams as (tm, tk) tiles; x is fully VMEM-resident (constant index
    map) and sliced in-kernel, so it is DMA'd from HBM exactly once.
    """
    k = pl.program_id(1)

    @pl.when(k == 0)
    def _init():
        acc_ref[...] = jnp.zeros_like(acc_ref)

    tk = adj_ref.shape[1]
    start = pl.multiple_of(k * tk, tk)
    xb = x_ref[pl.ds(start, tk), :]
    acc_ref[...] += jnp.dot(adj_ref[...], xb,
                            preferred_element_type=jnp.float32)

    @pl.when(k == pl.num_programs(1) - 1)
    def _finalize():
        agg = acc_ref[...].astype(jnp.bfloat16)
        h = jnp.dot(agg, w_ref[...], preferred_element_type=jnp.float32)
        h_ref[...] = jnp.maximum(h + b_ref[...], 0.0).astype(h_ref.dtype)


def _gcn_head_kernel(adj_ref, h1_ref, w2_ref, b2_ref, wf_ref, bf_ref,
                     q_ref, acc_ref):
    """Second GCN layer fused with the Q-value head, tiled like above."""
    k = pl.program_id(1)

    @pl.when(k == 0)
    def _init():
        acc_ref[...] = jnp.zeros_like(acc_ref)

    tk = adj_ref.shape[1]
    start = pl.multiple_of(k * tk, tk)
    hb = h1_ref[pl.ds(start, tk), :]
    acc_ref[...] += jnp.dot(adj_ref[...], hb,
                            preferred_element_type=jnp.float32)

    @pl.when(k == pl.num_programs(1) - 1)
    def _finalize():
        agg = acc_ref[...].astype(jnp.bfloat16)
        h = jnp.dot(agg, w2_ref[...], preferred_element_type=jnp.float32)
        h = jnp.maximum(h + b2_ref[...], 0.0)
        q = jnp.dot(h.astype(jnp.bfloat16), wf_ref[...],
                    preferred_element_type=jnp.float32) + bf_ref[...]
        q_ref[...] = q.astype(q_ref.dtype)


# --------------------------------------------------------------------------
# pallas_call wrappers
# --------------------------------------------------------------------------
def _tiled_compiler_params():
    return pltpu.CompilerParams(
        dimension_semantics=("parallel", "arbitrary"),   # rows -> v7x megacore
        vmem_limit_bytes=_VMEM_LIMIT,
    )


def _qnet_fused(adj_p, x_p, pp):
    n_pad = adj_p.shape[0]
    f_pad = x_p.shape[1]
    h_pad = pp["w1"].shape[1]
    o_pad = pp["wf"].shape[1]

    flops = (2 * n_pad * n_pad * (f_pad + h_pad)
             + 2 * n_pad * (f_pad * h_pad + h_pad * h_pad + h_pad * o_pad))
    operands = (adj_p, x_p, pp["w1"], pp["b1"], pp["w2"], pp["b2"],
                pp["wf"], pp["bf"])
    bytes_accessed = sum(int(a.size) * a.dtype.itemsize for a in operands) \
        + n_pad * o_pad * 4

    return pl.pallas_call(
        _qnet_fused_kernel,
        out_shape=jax.ShapeDtypeStruct((n_pad, o_pad), jnp.float32),
        compiler_params=pltpu.CompilerParams(vmem_limit_bytes=_VMEM_LIMIT),
        cost_estimate=pl.CostEstimate(flops=flops, transcendentals=0,
                                      bytes_accessed=bytes_accessed),
    )(*operands)


def _gcn_layer_tiled(adj_p, x_p, w_p, b_p, *, tm, tk, out_dtype):
    n_pad = adj_p.shape[0]
    f_pad = x_p.shape[1]
    h_pad = w_p.shape[1]
    grid = (n_pad // tm, n_pad // tk)

    flops = 2 * n_pad * n_pad * f_pad + 2 * n_pad * f_pad * h_pad
    bytes_accessed = (int(adj_p.size) * 2 + int(x_p.size) * 2
                      + int(w_p.size) * 2 + int(b_p.size) * 4
                      + n_pad * h_pad * jnp.dtype(out_dtype).itemsize)

    return pl.pallas_call(
        _gcn_layer_kernel,
        out_shape=jax.ShapeDtypeStruct((n_pad, h_pad), out_dtype),
        grid_spec=pltpu.PrefetchScalarGridSpec(
            num_scalar_prefetch=0,
            grid=grid,
            in_specs=[
                pl.BlockSpec((tm, tk), lambda i, k: (i, k)),        # adj tile
                pl.BlockSpec((n_pad, f_pad), lambda i, k: (0, 0)),  # x resident
                pl.BlockSpec((f_pad, h_pad), lambda i, k: (0, 0)),  # W resident
                pl.BlockSpec((1, h_pad), lambda i, k: (0, 0)),      # b resident
            ],
            out_specs=pl.BlockSpec((tm, h_pad), lambda i, k: (i, 0)),
            scratch_shapes=[pltpu.VMEM((tm, f_pad), jnp.float32)],
        ),
        compiler_params=_tiled_compiler_params(),
        cost_estimate=pl.CostEstimate(flops=flops, transcendentals=0,
                                      bytes_accessed=bytes_accessed),
    )(adj_p, x_p, w_p, b_p)


def _gcn_head_tiled(adj_p, h1_p, w2_p, b2_p, wf_p, bf_p, *, tm, tk):
    n_pad = adj_p.shape[0]
    h_in = h1_p.shape[1]
    h_pad = w2_p.shape[1]
    o_pad = wf_p.shape[1]
    grid = (n_pad // tm, n_pad // tk)

    flops = (2 * n_pad * n_pad * h_in
             + 2 * n_pad * (h_in * h_pad + h_pad * o_pad))
    bytes_accessed = (int(adj_p.size) * 2 + int(h1_p.size) * 2
                      + int(w2_p.size) * 2 + int(wf_p.size) * 2
                      + (int(b2_p.size) + int(bf_p.size)) * 4
                      + n_pad * o_pad * 4)

    return pl.pallas_call(
        _gcn_head_kernel,
        out_shape=jax.ShapeDtypeStruct((n_pad, o_pad), jnp.float32),
        grid_spec=pltpu.PrefetchScalarGridSpec(
            num_scalar_prefetch=0,
            grid=grid,
            in_specs=[
                pl.BlockSpec((tm, tk), lambda i, k: (i, k)),        # adj tile
                pl.BlockSpec((n_pad, h_in), lambda i, k: (0, 0)),   # h1 resident
                pl.BlockSpec((h_in, h_pad), lambda i, k: (0, 0)),   # W2 resident
                pl.BlockSpec((1, h_pad), lambda i, k: (0, 0)),      # b2
                pl.BlockSpec((h_pad, o_pad), lambda i, k: (0, 0)),  # Wf resident
                pl.BlockSpec((1, o_pad), lambda i, k: (0, 0)),      # bf
            ],
            out_specs=pl.BlockSpec((tm, o_pad), lambda i, k: (i, 0)),
            scratch_shapes=[pltpu.VMEM((tm, h_in), jnp.float32)],
        ),
        compiler_params=_tiled_compiler_params(),
        cost_estimate=pl.CostEstimate(flops=flops, transcendentals=0,
                                      bytes_accessed=bytes_accessed),
    )(adj_p, h1_p, w2_p, b2_p, wf_p, bf_p)


# --------------------------------------------------------------------------
# Public API: prepare params once, then forward
# --------------------------------------------------------------------------
def _round_up(x, m):
    return (x + m - 1) // m * m


def _pad2d(x, rows, cols, dtype):
    x = jnp.asarray(x, dtype)
    return jnp.pad(x, ((0, rows - x.shape[0]), (0, cols - x.shape[1])))


def prepare_params(params):
    """Pad + cast weights/biases ONCE (hoisted out of the forward pass)."""
    w1, b1, w2, b2, wf, bf = params
    f, h = w1.shape
    o = wf.shape[1]
    f_pad, h_pad, o_pad = (_round_up(d, 128) for d in (f, h, o))
    return {
        "w1": _pad2d(w1, f_pad, h_pad, jnp.bfloat16),
        "b1": _pad2d(jnp.reshape(b1, (1, -1)), 1, h_pad, jnp.float32),
        "w2": _pad2d(w2, h_pad, h_pad, jnp.bfloat16),
        "b2": _pad2d(jnp.reshape(b2, (1, -1)), 1, h_pad, jnp.float32),
        "wf": _pad2d(wf, h_pad, o_pad, jnp.bfloat16),
        "bf": _pad2d(jnp.reshape(bf, (1, -1)), 1, o_pad, jnp.float32),
        "dims": (f, h, o, f_pad, h_pad, o_pad),
    }


def _pick_tiles(n_pad):
    tk = min(_TILE, n_pad)
    tm = min(_TILE, n_pad)
    # Ensure >= 2 row blocks so the "parallel" axis shards across v7x's 2 TCs.
    if n_pad // tm < 2 and n_pad % 512 == 0:
        tm = n_pad // 2          # still a multiple of 256
    return tm, tk


def qnetwork_forward(state, adj, prepared, *, path="auto"):
    """state [N, input_dim] f32, adj [N, N] f32 -> q_values [N, output_dim] f32."""
    f, h, o, f_pad, h_pad, o_pad = prepared["dims"]
    n = state.shape[0]

    # Estimate VMEM footprint of the fully-fused path.
    n_fused = _round_up(max(n, 8), 16)          # bf16 sublane granularity only
    fused_bytes = (n_fused * n_fused * 2                        # adj (bf16)
                   + n_fused * (f_pad + h_pad) * 2              # x, h1 (bf16)
                   + n_fused * (f_pad + 2 * h_pad + o_pad) * 4)  # f32 temps
    use_fused = (path == "fused"
                 or (path == "auto" and fused_bytes <= 12 * 1024 * 1024))

    if use_fused:
        n_pad = n_fused
        adj_p = _pad2d(adj, n_pad, n_pad, jnp.bfloat16)   # 0/1 -> exact in bf16
        x_p = _pad2d(state, n_pad, f_pad, jnp.bfloat16)
        q_pad = _qnet_fused(adj_p, x_p, prepared)
    else:
        n_pad = _round_up(n, _TILE)
        tm, tk = _pick_tiles(n_pad)
        adj_p = _pad2d(adj, n_pad, n_pad, jnp.bfloat16)
        x_p = _pad2d(state, n_pad, f_pad, jnp.bfloat16)
        # NOTE: padded rows of h1/q become relu(bias); correctness relies on
        # adj's padded *columns* being exactly zero and the final [:n] slice.
        h1 = _gcn_layer_tiled(adj_p, x_p, prepared["w1"], prepared["b1"],
                              tm=tm, tk=tk, out_dtype=jnp.bfloat16)
        q_pad = _gcn_head_tiled(adj_p, h1, prepared["w2"], prepared["b2"],
                                prepared["wf"], prepared["bf"], tm=tm, tk=tk)

    return q_pad[:n, :o]


# --------------------------------------------------------------------------
# Reference + init
# --------------------------------------------------------------------------
def init_params(key, input_dim, hidden_dim, output_dim):
    """Deterministic synthetic parameter init (Glorot-ish uniform)."""
    k1, k2, k3 = jax.random.split(key, 3)

    def lin(k, fan_in, fan_out):
        bound = 1.0 / jnp.sqrt(fan_in)
        kw, kb = jax.random.split(k)
        w = jax.random.uniform(kw, (fan_in, fan_out), jnp.float32, -bound, bound)
        b = jax.random.uniform(kb, (1, fan_out), jnp.float32, -bound, bound)
        return w, b

    w1, b1 = lin(k1, input_dim, hidden_dim)
    w2, b2 = lin(k2, hidden_dim, hidden_dim)
    wf, bf = lin(k3, hidden_dim, output_dim)
    return (w1, b1, w2, b2, wf, bf)


def reference_forward(state, adj, params):
    """Pure-JAX reference mirroring the kernels' bf16-in / f32-accumulate math."""
    w1, b1, w2, b2, wf, bf = params
    bf16 = jnp.bfloat16

    def mm(a, b_):
        return jnp.dot(a.astype(bf16), b_.astype(bf16),
                       preferred_element_type=jnp.float32)

    agg1 = mm(adj, state)
    h1 = jnp.maximum(mm(agg1, w1) + b1, 0.0).astype(bf16)
    agg2 = mm(adj, h1)
    h2 = jnp.maximum(mm(agg2, w2) + b2, 0.0)
    return mm(h2, wf) + bf


def _make_graph(key, n, input_dim):
    ks, ka = jax.random.split(key)
    state = jax.random.normal(ks, (n, input_dim), jnp.float32)
    raw = jax.random.uniform(ka, (n, n))
    adj = (raw + raw.T > 1.0).astype(jnp.float32)     # symmetric 0/1
    adj = jnp.maximum(adj, jnp.eye(n, dtype=jnp.float32))  # self-loops
    return state, adj


if __name__ == "__main__":
    INPUT_DIM = 16    # node feature size
    HIDDEN_DIM = 32
    OUTPUT_DIM = 4    # number of actions / Q-values per node
    N_NODES = 8

    key = jax.random.PRNGKey(0)
    k_graph, k_params = jax.random.split(key)

    state, adj = _make_graph(k_graph, N_NODES, INPUT_DIM)
    params = init_params(k_params, INPUT_DIM, HIDDEN_DIM, OUTPUT_DIM)
    prepared = prepare_params(params)   # padded/bf16 weights, built once

    # --- Small-N fused path (single launch, h1 stays in VMEM) --------------
    q = qnetwork_forward(state, adj, prepared)
    q = jax.block_until_ready(q)
    q_ref = reference_forward(state, adj, params)
    assert q.shape == (N_NODES, OUTPUT_DIM)
    assert jnp.allclose(q, q_ref, atol=2e-2, rtol=2e-2), (
        float(jnp.max(jnp.abs(q - q_ref))))

    # --- Larger-N check exercising the tiled (grid) path --------------------
    N2 = 512
    state2, adj2 = _make_graph(jax.random.PRNGKey(1), N2, INPUT_DIM)
    q2 = qnetwork_forward(state2, adj2, prepared, path="tiled")
    q2 = jax.block_until_ready(q2)
    q2_ref = reference_forward(state2, adj2, params)
    assert q2.shape == (N2, OUTPUT_DIM)
    err = float(jnp.max(jnp.abs(q2 - q2_ref)))
    scale = float(jnp.maximum(jnp.max(jnp.abs(q2_ref)), 1.0))
    assert err / scale < 2e-2, (err, scale)

    print("KERNEL_OK")
</pallas_src>

<mosaic_0001>
module attributes {stable_mosaic.version = 11 : i64} {
  func.func @_qnet_fused_kernel(%arg0: memref<16x16xbf16, #tpu.memory_space<vmem>>, %arg1: memref<16x128xbf16, #tpu.memory_space<vmem>>, %arg2: memref<128x128xbf16, #tpu.memory_space<vmem>>, %arg3: memref<1x128xf32, #tpu.memory_space<vmem>>, %arg4: memref<128x128xbf16, #tpu.memory_space<vmem>>, %arg5: memref<1x128xf32, #tpu.memory_space<vmem>>, %arg6: memref<128x128xbf16, #tpu.memory_space<vmem>>, %arg7: memref<1x128xf32, #tpu.memory_space<vmem>>, %arg8: memref<16x128xf32, #tpu.memory_space<vmem>>) attributes {dimension_semantics = [], scalar_prefetch = 0 : i64, scratch_operands = 0 : i64, tpu.core_type = #tpu.core_type<tc>} {
    %c0 = arith.constant 0 : index
    %c0_0 = arith.constant 0 : index
    %0 = vector.load %arg0[%c0, %c0_0] : memref<16x16xbf16, #tpu.memory_space<vmem>>, vector<16x16xbf16>
    %c0_1 = arith.constant 0 : index
    %c0_2 = arith.constant 0 : index
    %1 = vector.load %arg1[%c0_1, %c0_2] : memref<16x128xbf16, #tpu.memory_space<vmem>>, vector<16x128xbf16>
    %cst = arith.constant dense<0.000000e+00> : vector<16x128xf32>
    %2 = tpu.matmul %0, %1, %cst {dimension_numbers = #tpu.dot_dimension_numbers<[1], [0], [0], [1], [0, 0, 1, 1], [], []>} : vector<16x16xbf16>, vector<16x128xbf16>, vector<16x128xf32> -> vector<16x128xf32>
    %3 = arith.truncf %2 : vector<16x128xf32> to vector<16x128xbf16>
    %c0_3 = arith.constant 0 : index
    %c0_4 = arith.constant 0 : index
    %4 = vector.load %arg2[%c0_3, %c0_4] : memref<128x128xbf16, #tpu.memory_space<vmem>>, vector<128x128xbf16>
    %cst_5 = arith.constant dense<0.000000e+00> : vector<16x128xf32>
    %5 = tpu.matmul %3, %4, %cst_5 {dimension_numbers = #tpu.dot_dimension_numbers<[1], [0], [0], [1], [0, 0, 1, 1], [], []>} : vector<16x128xbf16>, vector<128x128xbf16>, vector<16x128xf32> -> vector<16x128xf32>
    %c0_6 = arith.constant 0 : index
    %c0_7 = arith.constant 0 : index
    %6 = vector.load %arg3[%c0_6, %c0_7] : memref<1x128xf32, #tpu.memory_space<vmem>>, vector<1x128xf32>
    %7 = vector.broadcast %6 : vector<1x128xf32> to vector<16x128xf32>
    %8 = arith.addf %5, %7 : vector<16x128xf32>
    %cst_8 = arith.constant 0.000000e+00 : f32
    %9 = vector.broadcast %cst_8 : f32 to vector<16x128xf32>
    %10 = arith.maximumf %8, %9 : vector<16x128xf32>
    %11 = arith.truncf %10 : vector<16x128xf32> to vector<16x128xbf16>
    %cst_9 = arith.constant dense<0.000000e+00> : vector<16x128xf32>
    %12 = tpu.matmul %0, %11, %cst_9 {dimension_numbers = #tpu.dot_dimension_numbers<[1], [0], [0], [1], [0, 0, 1, 1], [], []>} : vector<16x16xbf16>, vector<16x128xbf16>, vector<16x128xf32> -> vector<16x128xf32>
    %13 = arith.truncf %12 : vector<16x128xf32> to vector<16x128xbf16>
    %c0_10 = arith.constant 0 : index
    %c0_11 = arith.constant 0 : index
    %14 = vector.load %arg4[%c0_10, %c0_11] : memref<128x128xbf16, #tpu.memory_space<vmem>>, vector<128x128xbf16>
    %cst_12 = arith.constant dense<0.000000e+00> : vector<16x128xf32>
    %15 = tpu.matmul %13, %14, %cst_12 {dimension_numbers = #tpu.dot_dimension_numbers<[1], [0], [0], [1], [0, 0, 1, 1], [], []>} : vector<16x128xbf16>, vector<128x128xbf16>, vector<16x128xf32> -> vector<16x128xf32>
    %c0_13 = arith.constant 0 : index
    %c0_14 = arith.constant 0 : index
    %16 = vector.load %arg5[%c0_13, %c0_14] : memref<1x128xf32, #tpu.memory_space<vmem>>, vector<1x128xf32>
    %17 = vector.broadcast %16 : vector<1x128xf32> to vector<16x128xf32>
    %18 = arith.addf %15, %17 : vector<16x128xf32>
    %cst_15 = arith.constant 0.000000e+00 : f32
    %19 = vector.broadcast %cst_15 : f32 to vector<16x128xf32>
    %20 = arith.maximumf %18, %19 : vector<16x128xf32>
    %21 = arith.truncf %20 : vector<16x128xf32> to vector<16x128xbf16>
    %c0_16 = arith.constant 0 : index
    %c0_17 = arith.constant 0 : index
    %22 = vector.load %arg6[%c0_16, %c0_17] : memref<128x128xbf16, #tpu.memory_space<vmem>>, vector<128x128xbf16>
    %cst_18 = arith.constant dense<0.000000e+00> : vector<16x128xf32>
    %23 = tpu.matmul %21, %22, %cst_18 {dimension_numbers = #tpu.dot_dimension_numbers<[1], [0], [0], [1], [0, 0, 1, 1], [], []>} : vector<16x128xbf16>, vector<128x128xbf16>, vector<16x128xf32> -> vector<16x128xf32>
    %c0_19 = arith.constant 0 : index
    %c0_20 = arith.constant 0 : index
    %24 = vector.load %arg7[%c0_19, %c0_20] : memref<1x128xf32, #tpu.memory_space<vmem>>, vector<1x128xf32>
    %25 = vector.broadcast %24 : vector<1x128xf32> to vector<16x128xf32>
    %26 = arith.addf %23, %25 : vector<16x128xf32>
    %c0_21 = arith.constant 0 : index
    %c0_22 = arith.constant 0 : index
    %27 = vector.load %arg8[%c0_21, %c0_22] : memref<16x128xf32, #tpu.memory_space<vmem>>, vector<16x128xf32>
    tpu.vector_store %arg8[%c0_21, %c0_22], %26 {strides = array<i32>} : memref<16x128xf32, #tpu.memory_space<vmem>>, vector<16x128xf32>,
    return
  }
}

</mosaic_0001>

<bundles_post_ra>
// kernel: tpu_custom_call.1
= control target key start
LH: loop header
LB: loop body
LE: loop exit
PB: predicated region body
PF: predicated region fallthrough
CT: control target
= control target key end

     0   :  { %13 = vsyncpa [#allocation3], 0  ;;  %s1082_s0 = inlined_call_operand.hbm [shape: bf16[16,16], index: 0, kind: input, shape index: {}]   ;;  %s1083_s1 = inlined_call_operand.hbm [shape: bf16[16,128], index: 1, kind: input, shape index: {}]   ;;  %s1084_s2 = inlined_call_operand.hbm [shape: bf16[128,128], index: 2, kind: input, shape index: {}]   ;;  %s1085_s3 = inlined_call_operand.vmem [shape: f32[1,128], index: 3, kind: input, shape index: {}]   ;;  %s1086_s4 = inlined_call_operand.hbm [shape: bf16[128,128], index: 4, kind: input, shape index: {}]   ;;  %s1087_s5 = inlined_call_operand.vmem [shape: f32[1,128], index: 5, kind: input, shape index: {}]   ;;  %s1088_s6 = inlined_call_operand.hbm [shape: bf16[128,128], index: 6, kind: input, shape index: {}]   ;;  %s1089_s7 = inlined_call_operand.vmem [shape: f32[1,128], index: 7, kind: input, shape index: {}]   ;;  %s1090_s8 = inlined_call_operand.hbm [shape: f32[16,128], index: 8, kind: output, shape index: {}]  }
   0x1   :  { %14 = vsyncpa [#allocation6], 0 }
   0x2   :  { %15 = vsyncpa [#allocation9], 0 }
   0x3   :  { %16 = vsyncpa [#allocation4], 0  ;;  %s877_s27 = smov [#allocation5]   ;;  %s878_s29 = smov [#allocation8]  }
   0x4   :  { %s34_s28 = sshll.u32 %s877_s27, 4  ;;  %s60_s30 = sshll.u32 %s878_s29, 4  ;;  %s35_s28 = int_to_ptr.vmem [resolvable:$true] %s34_s28  ;;  %s934_s30 = int_to_ptr.vmem [resolvable:$true] %s60_s30 }
   0x5   :  { %s737_s11 = scalar_lea.hbm %s1083_s1, 128 }
   0x6   :  { %p738_p0 = scmp.ne.s32.totalorder %s1083_s1, %s737_s11  ;;  %p741_p1 = scmp.lt.u32.totalorder %s737_s11, %s1083_s1 }
   0x8   :  { %p743_p2 = pnand %p741_p1, %p738_p0 }
   0xa   :  { %746 = shalt.err (!%p743_p2)
}
   0xb   :  { %s747_s16 = scalar_lea.vmem %s35_s28, 128  ;;  %p752_p4 = scmp.lt.s32.totalorder %s35_s28, %s35_s28 }
   0xc   :  { %p748_p3 = scmp.ne.s32.totalorder %s35_s28, %s747_s16  ;;  %p753_p5 = scmp.lt.s32.totalorder %s747_s16, %s747_s16 }
   0xe   :  { %p754_p6 = por %p753_p5, %p752_p4 }
  0x10   :  { %p755_p7 = pnand %p754_p6, %p748_p3 }
  0x12   :  { %758 = shalt.err (!%p755_p7)
}
  0x13   :  { %s879_s17 = smov 64   ;;  %s880_s18 = smov 4  }
  0x14   :  { %40 = dma.hbm_to_vmem [thread:$0]  %s1083_s1, 128, %s35_s28, [#allocation6], %s879_s17, %s879_s17, %s880_s18  }
  0x15   :  { %s759_s23 = scalar_lea.hbm %s1086_s4, 1024 }
  0x16   :  { %p760_p8 = scmp.ne.s32.totalorder %s1086_s4, %s759_s23  ;;  %p763_p9 = scmp.lt.u32.totalorder %s759_s23, %s1086_s4 }
  0x18   :  { %p765_p10 = pnand %p763_p9, %p760_p8 }
  0x1a   :  { %768 = shalt.err (!%p765_p10)
}
  0x1b   :  { %s769_s29 = scalar_lea.vmem %s934_s30, 1024  ;;  %p774_p12 = scmp.lt.s32.totalorder %s934_s30, %s934_s30 }
  0x1c   :  { %p770_p11 = scmp.ne.s32.totalorder %s934_s30, %s769_s29  ;;  %p775_p13 = scmp.lt.s32.totalorder %s769_s29, %s769_s29 }
  0x1e   :  { %p776_p0 = por %p775_p13, %p774_p12 }
  0x20   :  { %p777_p1 = pnand %p776_p0, %p770_p11 }
  0x22   :  { %780 = shalt.err (!%p777_p1)
}
  0x23   :  { %66 = dma.hbm_to_vmem [thread:$0]  %s1086_s4, 1024, %s934_s30, [#allocation9], %s879_s17, %s879_s17, %s880_s18  }
  0x24   :  { %s881_s9 = smov [#allocation2]   ;;  %s882_s11 = smov [#allocation7]  }
  0x25   :  { %s22_s10 = sshll.u32 %s881_s9, 4  ;;  %s46_s12 = sshll.u32 %s882_s11, 4  ;;  %s23_s10 = int_to_ptr.vmem [resolvable:$true] %s22_s10  ;;  %s971_s12 = int_to_ptr.vmem [resolvable:$true] %s46_s12 }
  0x26   :  { %s781_s15 = scalar_lea.hbm %s1082_s0, 128 }
  0x27   :  { %p782_p2 = scmp.ne.s32.totalorder %s1082_s0, %s781_s15  ;;  %p785_p3 = scmp.lt.u32.totalorder %s781_s15, %s1082_s0 }
  0x29   :  { %p787_p4 = pnand %p785_p3, %p782_p2 }
  0x2b   :  { %790 = shalt.err (!%p787_p4)
}
  0x2c   :  { %s791_s4 = scalar_lea.vmem %s23_s10, 128  ;;  %p796_p6 = scmp.lt.s32.totalorder %s23_s10, %s23_s10 }
  0x2d   :  { %p792_p5 = scmp.ne.s32.totalorder %s23_s10, %s791_s4  ;;  %p797_p7 = scmp.lt.s32.totalorder %s791_s4, %s791_s4 }
  0x2f   :  { %p798_p8 = por %p797_p7, %p796_p6 }
  0x31   :  { %p799_p9 = pnand %p798_p8, %p792_p5 }
  0x33   :  { %802 = shalt.err (!%p799_p9)
}
  0x34   :  { %28 = dma.hbm_to_vmem [thread:$0]  %s1082_s0, 128, %s23_s10, [#allocation3], %s879_s17, %s879_s17, %s880_s18  }
  0x35   :  { %s803_s25 = scalar_lea.hbm %s1084_s2, 1024 }
  0x36   :  { %p804_p10 = scmp.ne.s32.totalorder %s1084_s2, %s803_s25  ;;  %p807_p11 = scmp.lt.u32.totalorder %s803_s25, %s1084_s2 }
  0x38   :  { %p809_p12 = pnand %p807_p11, %p804_p10 }
  0x3a   :  { %812 = shalt.err (!%p809_p12)
}
  0x3b   :  { %s813_s28 = scalar_lea.vmem %s971_s12, 1024  ;;  %p818_p0 = scmp.lt.s32.totalorder %s971_s12, %s971_s12 }
  0x3c   :  { %p814_p13 = scmp.ne.s32.totalorder %s971_s12, %s813_s28  ;;  %p819_p1 = scmp.lt.s32.totalorder %s813_s28, %s813_s28 }
  0x3e   :  { %p820_p2 = por %p819_p1, %p818_p0 }
  0x40   :  { %p821_p3 = pnand %p820_p2, %p814_p13 }
  0x42   :  { %824 = shalt.err (!%p821_p3)
}
  0x43   :  { %52 = dma.hbm_to_vmem [thread:$0]  %s1084_s2, 1024, %s971_s12, [#allocation6], %s879_s17, %s879_s17, %s880_s18  }
  0x44   :  { %s883_s10 = smov [#allocation10]   ;;  %s825_s15 = scalar_lea.hbm %s1088_s6, 1024 }
  0x45   :  { %s74_s11 = sshll.u32 %s883_s10, 4  ;;  %p826_p4 = scmp.ne.s32.totalorder %s1088_s6, %s825_s15  ;;  %s75_s11 = int_to_ptr.vmem [resolvable:$true] %s74_s11 }
  0x46   :  { %p829_p5 = scmp.lt.u32.totalorder %s825_s15, %s1088_s6 }
  0x48   :  { %p831_p6 = pnand %p829_p5, %p826_p4 }
  0x4a   :  { %834 = shalt.err (!%p831_p6)
}
  0x4b   :  { %s835_s4 = scalar_lea.vmem %s75_s11, 1024  ;;  %p840_p8 = scmp.lt.s32.totalorder %s75_s11, %s75_s11 }
  0x4c   :  { %p836_p7 = scmp.ne.s32.totalorder %s75_s11, %s835_s4  ;;  %p841_p9 = scmp.lt.s32.totalorder %s835_s4, %s835_s4 }
  0x4e   :  { %p842_p10 = por %p841_p9, %p840_p8 }
  0x50   :  { %p843_p11 = pnand %p842_p10, %p836_p7 }
  0x52   :  { %846 = shalt.err (!%p843_p11)
}
  0x53   :  { %80 = dma.hbm_to_vmem [thread:$0]  %s1088_s6, 1024, %s75_s11, [#allocation9], %s879_s17, %s879_s17, %s880_s18  }
  0x54   :  { %869 = dma.done.wait [#allocation3], 128  }
  0x55   :  { %870 = vsyncadd [#allocation3], 4294967168 }
  0x56   :  { %871 = dma.done.wait [#allocation6], 1152  }
  0x57   :  { %872 = vsyncadd [#allocation6], 4294966144 }
  0x58   :  { %873 = dma.done.wait [#allocation9], 2048  }
  0x59   :  { %874 = vsyncadd [#allocation9], 4294965248  ;;  %v884_v0 = vmov 0.0   ;;  %vm885_vm0 = vmmov 0   ;;  %v711_v1 = vld [vmem:[#allocation5] sm:$0xff]   ;;  %v712_v2 = vld [vmem:[#allocation2] sm:$0xff]  }
  0x5a   :  { %627 = vmatprep.subr.bf16.mxu0 %v884_v0  ;;  %629 = vmatprep.mubr.msk.bf16.mxu0 %vm885_vm0, %v884_v0  ;;  %vm114_vm1 = vcmask 130048   ;;  %v713_v3 = vld [vmem:[#allocation7] sm:$0xff]   ;;  %v714_v4 = vld [vmem:[#allocation7 + $0x8] sm:$0xff]   ;;  %v715_v5 = vld [vmem:[#allocation7 + $0x10] sm:$0xff]   ;;  %s886_s23 = smov [#allocation11]  }
  0x5b   :  { %633 = vmatprep.subr.bf16.mxu1 %v884_v0  ;;  %649 = vmatprep.mubr.msk.bf16.mxu1 %vm885_vm0, %v884_v0  ;;  %v716_v6 = vld [vmem:[#allocation7 + $0x18] sm:$0xff]   ;;  %v717_v7 = vld [vmem:[#allocation7 + $0x20] sm:$0xff]   ;;  %v718_v8 = vld [vmem:[#allocation7 + $0x28] sm:$0xff]   ;;  %s551_s24 = sshll.u32 %s886_s23, 4  ;;  %s552_s24 = int_to_ptr.vmem [resolvable:$true] %s551_s24 }
  0x5c   :  { %628 = vmatpush3.bf16.msra.mxu0 %v711_v1  ;;  %634 = vmatpush3.bf16.msra.mxu1 %v713_v3  ;;  %v719_v9 = vld [vmem:[#allocation7 + $0x30] sm:$0xff]   ;;  %v720_v10 = vld [vmem:[#allocation7 + $0x38] sm:$0xff]   ;;  %v721_v26 = vld [vmem:[#allocation8] sm:$0xff]   ;;  %p852_p13 = scmp.lt.s32.totalorder %s552_s24, %s552_s24 }
  0x5d   :  { %653 = vmatprep.subr.bf16.mxu0 %v884_v0  ;;  %635 = vmatprep.subr.bf16.mxu1 %v884_v0  ;;  %v568_v16 = vld [vmem:[%s1085_s3] ss:$0 sm:$0xff]  ;;  %v722_v27 = vld [vmem:[#allocation8 + $0x8] sm:$0xff]   ;;  %v724_v29 = vld [vmem:[#allocation8 + $0x18] sm:$0xff]  }
  0x5e   :  { %v723_v28 = vld [vmem:[#allocation8 + $0x10] sm:$0xff]   ;;  %v725_v30 = vld [vmem:[#allocation8 + $0x20] sm:$0xff]   ;;  %v726_v31 = vld [vmem:[#allocation8 + $0x28] sm:$0xff]  }
  0x5f   :  { %630 = vmatmul.mubr.msk.bf16.vlgmr.msra.gmra.mrb[0].mxu0 %vm114_vm1, %v712_v2  ;;  %v727_v32 = vld [vmem:[#allocation8 + $0x30] sm:$0xff]   ;;  %v728_v33 = vld [vmem:[#allocation8 + $0x38] sm:$0xff]   ;;  %v729_v34 = vld [vmem:[#allocation10] sm:$0xff]  }
  0x60   :  { %655 = vmatprep.mubr.msk.bf16.mxu0 %vm885_vm0, %v884_v0  ;;  %636 = vmatpush3.bf16.msra.mxu1 %v714_v4  ;;  %v730_v35 = vld [vmem:[#allocation10 + $0x8] sm:$0xff]   ;;  %v731_v36 = vld [vmem:[#allocation10 + $0x10] sm:$0xff]   ;;  %v732_v37 = vld [vmem:[#allocation10 + $0x18] sm:$0xff]  }
  0x61   :  { %637 = vmatprep.subr.bf16.mxu1 %v884_v0  ;;  %v733_v38 = vld [vmem:[#allocation10 + $0x20] sm:$0xff]   ;;  %v734_v39 = vld [vmem:[#allocation10 + $0x28] sm:$0xff]   ;;  %v735_v45 = vld [vmem:[#allocation10 + $0x30] sm:$0xff]  }
  0x62   :  { %v736_v46 = vld [vmem:[#allocation10 + $0x38] sm:$0xff]   ;;  %v578_v47 = vld [vmem:[%s1087_s5] ss:$0 sm:$0xff]  ;;  %s847_s5 = scalar_lea.vmem %s552_s24, 256 }
  0x63   :  { %v587_v57 = vld [vmem:[%s1089_s7] ss:$0 sm:$0xff]  ;;  %p848_p12 = scmp.ne.s32.totalorder %s552_s24, %s847_s5  ;;  %p853_p0 = scmp.lt.s32.totalorder %s847_s5, %s847_s5 }
  0x64   :  { %638 = vmatpush3.bf16.msra.mxu1 %v715_v5 }
  0x65   :  { %639 = vmatprep.subr.bf16.mxu1 %v884_v0  ;;  %p854_p1 = por %p853_p0, %p852_p13 }
  0x67   :  { %p855_p2 = pnand %p854_p1, %p848_p12 }
  0x68   :  { %640 = vmatpush3.bf16.msra.mxu1 %v716_v6 }
  0x69   :  { %641 = vmatprep.subr.bf16.mxu1 %v884_v0 }
  0x6c   :  { %642 = vmatpush3.bf16.msra.mxu1 %v717_v7 }
  0x6d   :  { %643 = vmatprep.subr.bf16.mxu1 %v884_v0 }
  0x70   :  { %644 = vmatpush3.bf16.msra.mxu1 %v718_v8 }
  0x71   :  { %645 = vmatprep.subr.bf16.mxu1 %v884_v0 }
  0x74   :  { %646 = vmatpush3.bf16.msra.mxu1 %v719_v9 }
  0x75   :  { %647 = vmatprep.subr.bf16.mxu1 %v884_v0 }
  0x78   :  { %648 = vmatpush3.bf16.msra.mxu1 %v720_v10 }
  0x79   :  { %679 = vmatprep.subr.bf16.mxu1 %v884_v0 }
 0x132   :  { %v152_v11 = vpop.f32.mrb[0].mxu0 }
 0x133   :  { %v631_v12 = vpop.f32.mrb[1].mxu0 }
 0x134   :  { %v155_v13 = vpop.f32.mrb[2].mxu0 }
 0x135   :  { %v159_v14 = vpack.c.bf16 %v155_v13, %v152_v11  ;;  %v632_v15 = vpop.f32.mrb[3].mxu0 }
 0x137   :  { %650 = vmatmul.mubr.bf16.vlgmr.msra.gmra.mrb[0].mxu1 %v159_v14 }
 0x138   :  { %695 = vmatprep.mubr.msk.bf16.mxu1 %vm885_vm0, %v884_v0  ;;  %680 = vmatpush3.bf16.msra.mxu1 %v729_v34 }
 0x139   :  { %681 = vmatprep.subr.bf16.mxu1 %v884_v0 }
 0x13c   :  { %682 = vmatpush3.bf16.msra.mxu1 %v730_v35 }
 0x13d   :  { %683 = vmatprep.subr.bf16.mxu1 %v884_v0 }
 0x140   :  { %684 = vmatpush3.bf16.msra.mxu1 %v731_v36 }
 0x141   :  { %685 = vmatprep.subr.bf16.mxu1 %v884_v0 }
 0x144   :  { %686 = vmatpush3.bf16.msra.mxu1 %v732_v37 }
 0x145   :  { %687 = vmatprep.subr.bf16.mxu1 %v884_v0 }
 0x148   :  { %688 = vmatpush3.bf16.msra.mxu1 %v733_v38 }
 0x149   :  { %689 = vmatprep.subr.bf16.mxu1 %v884_v0 }
 0x14c   :  { %690 = vmatpush3.bf16.msra.mxu1 %v734_v39 }
 0x14d   :  { %691 = vmatprep.subr.bf16.mxu1 %v884_v0 }
 0x150   :  { %692 = vmatpush3.bf16.msra.mxu1 %v735_v45 }
 0x151   :  { %693 = vmatprep.subr.bf16.mxu1 %v884_v0 }
 0x154   :  { %694 = vmatpush3.bf16.msra.mxu1 %v736_v46 }
 0x20a   :  { %v265_v17 = vpop.f32.mrb[0].mxu1 }
 0x20b   :  { %v266_v18 = vadd.f32 %v568_v16, %v265_v17  ;;  %v651_v19 = vpop.f32.mrb[1].mxu1 }
 0x20c   :  { %v268_v20 = vpop.f32.mrb[2].mxu1 }
 0x20d   :  { %v269_v21 = vadd.f32 %v568_v16, %v268_v20  ;;  %v652_v22 = vpop.f32.mrb[3].mxu1  ;;  %v272_v23 = vmax.f32 %v266_v18, 0.0 }
 0x20f   :  { %v273_v24 = vmax.f32 %v269_v21, 0.0 }
 0x211   :  { %v274_v25 = vpack.c.bf16 %v273_v24, %v272_v23 }
 0x213   :  { %654 = vmatpush3.bf16.msra.mxu0 %v274_v25 }
 0x214   :  { %659 = vmatprep.subr.bf16.mxu0 %v884_v0 }
 0x216   :  { %656 = vmatmul.mubr.msk.bf16.vlgmr.msra.gmra.mrb[4].mxu0 %vm114_vm1, %v712_v2 }
 0x217   :  { %660 = vmatpush3.bf16.msra.mxu0 %v721_v26  ;;  %675 = vmatprep.mubr.msk.bf16.mxu0 %vm885_vm0, %v884_v0 }
 0x218   :  { %661 = vmatprep.subr.bf16.mxu0 %v884_v0 }
 0x21b   :  { %662 = vmatpush3.bf16.msra.mxu0 %v722_v27 }
 0x21c   :  { %663 = vmatprep.subr.bf16.mxu0 %v884_v0 }
 0x21f   :  { %664 = vmatpush3.bf16.msra.mxu0 %v723_v28 }
 0x220   :  { %665 = vmatprep.subr.bf16.mxu0 %v884_v0 }
 0x223   :  { %666 = vmatpush3.bf16.msra.mxu0 %v724_v29 }
 0x224   :  { %667 = vmatprep.subr.bf16.mxu0 %v884_v0 }
 0x227   :  { %668 = vmatpush3.bf16.msra.mxu0 %v725_v30 }
 0x228   :  { %669 = vmatprep.subr.bf16.mxu0 %v884_v0 }
 0x22b   :  { %670 = vmatpush3.bf16.msra.mxu0 %v726_v31 }
 0x22c   :  { %671 = vmatprep.subr.bf16.mxu0 %v884_v0 }
 0x22f   :  { %672 = vmatpush3.bf16.msra.mxu0 %v727_v32 }
 0x230   :  { %673 = vmatprep.subr.bf16.mxu0 %v884_v0 }
 0x233   :  { %674 = vmatpush3.bf16.msra.mxu0 %v728_v33 }
 0x2e9   :  { %v309_v40 = vpop.f32.mrb[4].mxu0 }
 0x2ea   :  { %v657_v41 = vpop.f32.mrb[5].mxu0 }
 0x2eb   :  { %v312_v42 = vpop.f32.mrb[6].mxu0 }
 0x2ec   :  { %v316_v43 = vpack.c.bf16 %v312_v42, %v309_v40  ;;  %v658_v44 = vpop.f32.mrb[7].mxu0 }
 0x2ee   :  { %676 = vmatmul.mubr.bf16.vlgmr.msra.gmra.mrb[8].mxu0 %v316_v43 }
 0x3c1   :  { %v422_v48 = vpop.f32.mrb[8].mxu0 }
 0x3c2   :  { %v423_v49 = vadd.f32 %v578_v47, %v422_v48  ;;  %v677_v50 = vpop.f32.mrb[9].mxu0 }
 0x3c3   :  { %v425_v51 = vpop.f32.mrb[10].mxu0 }
 0x3c4   :  { %v426_v52 = vadd.f32 %v578_v47, %v425_v51  ;;  %v678_v53 = vpop.f32.mrb[11].mxu0  ;;  %v429_v54 = vmax.f32 %v423_v49, 0.0 }
 0x3c6   :  { %v430_v55 = vmax.f32 %v426_v52, 0.0 }
 0x3c8   :  { %v431_v56 = vpack.c.bf16 %v430_v55, %v429_v54 }
 0x3ca   :  { %696 = vmatmul.mubr.bf16.vlgmr.msra.gmra.mrb[4].mxu1 %v431_v56 }
 0x49d   :  { %v537_v58 = vpop.f32.mrb[4].mxu1 }
 0x49e   :  { %v538_v59 = vadd.f32 %v587_v57, %v537_v58  ;;  %v697_v60 = vpop.f32.mrb[5].mxu1 }
 0x49f   :  { %v540_v61 = vpop.f32.mrb[6].mxu1 }
 0x4a0   :  { %544 = vst [vmem:[#allocation11] sm:$0xff] %v538_v59  ;;  %v541_v62 = vadd.f32 %v587_v57, %v540_v61  ;;  %v698_v63 = vpop.f32.mrb[7].mxu1 }
 0x4a2   :  { %545 = vst [vmem:[#allocation11 + $0x8] sm:$0xff] %v541_v62 }
 0x4a3   :  { %858 = shalt.err (!%p855_p2)
}
 0x4a4   :  { %s859_s26 = scalar_lea.hbm %s1090_s8, 256 }
 0x4a5   :  { %p860_p3 = scmp.ne.s32.totalorder %s1090_s8, %s859_s26  ;;  %p863_p4 = scmp.lt.u32.totalorder %s859_s26, %s1090_s8 }
 0x4a7   :  { %p865_p5 = pnand %p863_p4, %p860_p3 }
 0x4a9   :  { %868 = shalt.err (!%p865_p5)
}
 0x4aa   :  { %s887_s0 = smov 128   ;;  %s888_s9 = smov 8  }
 0x4ab   :  { %557 = dma.vmem_to_hbm [thread:$0]  %s552_s24, 256, %s1090_s8, [#allocation4], %s887_s0, %s887_s0, %s888_s9  }
 0x4ac   :  { %875 = dma.done.wait [#allocation4], 256  }
 0x4ad   :  { %876 = vsyncadd [#allocation4], 4294967040 }
 0x4ae   :  { %561 = vsyncpa [#allocation3], 1 }
 0x4af   :  { %562 = vsyncpa [#allocation6], 1 }
 0x4b0   :  { %563 = vsyncpa [#allocation9], 1 }
 0x4b1   :  { %564 = vsyncpa [#allocation4], 1 }

</bundles_post_ra>
